<compile_context>
chip_gen: v7x
topology: tpu7x:2x2x1
jax: 0.10.0
libtpu: 0.0.40
codegen_flags: <defaults>
</compile_context>

<pallas_src>
import functools

import jax
import jax.numpy as jnp
from jax.experimental import pallas as pl
from jax.experimental.pallas import tpu as pltpu


BN_EPS = 1e-5
NEG_SLOPE = 0.01
LANE = 128
MAX_TILE_B = 2048       # per-step blocks (cat+num+out, dbl-buffered) ~1.3 MiB; intermediates ~6 MiB
MIN_SPLIT_B = 512       # batches >= 2*this are split into >= 2 grid steps (v7x has 2 TCs)


def _round_up(x, m):
    return (x + m - 1) // m * m


# ------------------------------ fused kernel ---------------------------------
def _fused_kernel(xcat_ref, xnum_ref, tbl_ref,
                  w1_ref, b1_ref, w2_ref, b2_ref, w3_ref, b3_ref,
                  o_ref, *, row_offsets, num_row_base, card_pad):
    """embedding-gather(+numeric concat) as one MXU matmul, then
    (Linear w/ BN folded) -> LeakyReLU -> (Linear w/ BN folded) -> LeakyReLU -> Linear.

    Weights bf16 [in, out]; biases f32 [1, out]; f32 MXU accumulation; bf16 store.
    """
    tb = xcat_ref.shape[0]
    n_cat = xcat_ref.shape[1]
    n_num = xnum_ref.shape[1]

    idx = xcat_ref[...]                                    # (TB, n_cat) int32
    xnum = xnum_ref[...]                                   # (TB, n_num) f32
    col = jax.lax.broadcasted_iota(jnp.int32, (tb, card_pad), 1)

    # Multi-hot matrix: 1.0 at each feature's (offset) categorical index,
    # raw numeric value at its dedicated identity row of the packed table.
    mh = jnp.zeros((tb, card_pad), jnp.float32)
    for f in range(n_cat):                                 # static, n_cat == 8
        mh = mh + (col == (idx[:, f:f + 1] + row_offsets[f])).astype(jnp.float32)
    for j in range(n_num):                                 # static, n_num == 6
        mh = jnp.where(col == (num_row_base + j), xnum[:, j:j + 1], mh)

    # 8 gathers + 2 concats == one (TB,128)x(128,128) matmul on the idle MXU.
    x = jnp.dot(mh.astype(jnp.bfloat16), tbl_ref[...],
                preferred_element_type=jnp.float32)        # (TB, in_pad) f32

    h = jnp.dot(x.astype(jnp.bfloat16), w1_ref[...],
                preferred_element_type=jnp.float32) + b1_ref[...]
    h = jnp.where(h >= 0.0, h, NEG_SLOPE * h)              # LeakyReLU
    # Dropout: identity (eval mode)

    h = jnp.dot(h.astype(jnp.bfloat16), w2_ref[...],
                preferred_element_type=jnp.float32) + b2_ref[...]
    h = jnp.where(h >= 0.0, h, NEG_SLOPE * h)              # LeakyReLU
    # Dropout: identity (eval mode)

    out = jnp.dot(h.astype(jnp.bfloat16), w3_ref[...],
                  preferred_element_type=jnp.float32) + b3_ref[...]
    o_ref[...] = out.astype(o_ref.dtype)                   # bf16 lane-dense store


def _choose_tiling(batch):
    """Tile the batch with <=16-row padding waste, >=2 steps for big batches."""
    b16 = max(_round_up(batch, 16), 16)
    n_steps = pl.cdiv(b16, MAX_TILE_B)
    if n_steps < 2 and b16 >= 2 * MIN_SPLIT_B:
        n_steps = 2                        # keep both v7x TensorCores busy
    tile_b = _round_up(pl.cdiv(b16, n_steps), 16)
    return tile_b, n_steps * tile_b


def tabular_forward_pallas(x_cat, x_num, packed_table, kernel_params,
                           row_offsets, num_row_base, num_classes):
    """x_cat: [B, n_cat] int, x_num: [B, n_num] float. Returns [B, num_classes] f32."""
    w1, b1, w2, b2, w3, b3 = kernel_params
    batch, n_cat = x_cat.shape
    n_num = x_num.shape[1]
    card_pad, in_pad = packed_table.shape
    out_pad = w3.shape[1]

    tile_b, b_pad = _choose_tiling(batch)
    grid = (b_pad // tile_b,)

    # Only tiny index / numeric arrays are padded on the host (<= 15 extra rows).
    x_cat_p = jnp.pad(x_cat.astype(jnp.int32), ((0, b_pad - batch), (0, 0)))
    x_num_p = jnp.pad(x_num.astype(jnp.float32), ((0, b_pad - batch), (0, 0)))

    def resident(shape):
        # same block every grid step -> stays resident in VMEM
        return pl.BlockSpec(shape, lambda i: (0, 0))

    kernel = functools.partial(
        _fused_kernel,
        row_offsets=row_offsets, num_row_base=num_row_base, card_pad=card_pad)

    flops = 2 * b_pad * (card_pad * in_pad
                         + w1.shape[0] * w1.shape[1]
                         + w2.shape[0] * w2.shape[1]
                         + w3.shape[0] * w3.shape[1])
    bytes_accessed = (
        x_cat_p.size * 4 + x_num_p.size * 4 + b_pad * out_pad * 2
        + int(packed_table.size) * packed_table.dtype.itemsize
        + sum(int(a.size) * a.dtype.itemsize for a in kernel_params))

    out = pl.pallas_call(
        kernel,
        out_shape=jax.ShapeDtypeStruct((b_pad, out_pad), jnp.bfloat16),
        grid_spec=pltpu.PrefetchScalarGridSpec(
            num_scalar_prefetch=0,
            grid=grid,
            in_specs=[
                pl.BlockSpec((tile_b, n_cat), lambda i: (i, 0)),   # x_cat tile
                pl.BlockSpec((tile_b, n_num), lambda i: (i, 0)),   # x_num tile
                resident(packed_table.shape),
                resident(w1.shape), resident(b1.shape),
                resident(w2.shape), resident(b2.shape),
                resident(w3.shape), resident(b3.shape),
            ],
            out_specs=pl.BlockSpec((tile_b, out_pad), lambda i: (i, 0)),
        ),
        compiler_params=pltpu.CompilerParams(
            dimension_semantics=("parallel",),
            vmem_limit_bytes=48 << 20),
        cost_estimate=pl.CostEstimate(
            flops=flops, transcendentals=0, bytes_accessed=bytes_accessed),
    )(x_cat_p, x_num_p, packed_table, w1, b1, w2, b2, w3, b3)

    # bf16 kernel output; upcast only the real (3) class columns.
    return out[:batch, :num_classes].astype(jnp.float32)


# --------------------------- host-side param prep ----------------------------
def make_params(key, cat_cardinalities, cat_embedding_dims,
                num_numeric_features, hidden_dims, num_classes):
    """Deterministic raw parameters (shapes match the PyTorch module)."""
    total_emb_dim = sum(cat_embedding_dims)
    input_dim = total_emb_dim + num_numeric_features

    keys = jax.random.split(key, 32)
    k_iter = iter(keys)

    emb_tables = []
    for card, emb_dim in zip(cat_cardinalities, cat_embedding_dims):
        emb_tables.append(
            jax.random.normal(next(k_iter), (card, emb_dim), jnp.float32) * 0.1)

    def linear(kw, kb, in_dim, out_dim):
        bound = 1.0 / jnp.sqrt(in_dim)
        w = jax.random.uniform(kw, (in_dim, out_dim), jnp.float32, -bound, bound)
        b = jax.random.uniform(kb, (1, out_dim), jnp.float32, -bound, bound)
        return w, b

    h1, h2 = hidden_dims
    w1, b1 = linear(next(k_iter), next(k_iter), input_dim, h1)
    w2, b2 = linear(next(k_iter), next(k_iter), h1, h2)
    w3, b3 = linear(next(k_iter), next(k_iter), h2, num_classes)

    def bn(kg, kb, km, kv, dim):
        gamma = 1.0 + 0.05 * jax.random.normal(kg, (1, dim), jnp.float32)
        beta = 0.05 * jax.random.normal(kb, (1, dim), jnp.float32)
        mean = 0.05 * jax.random.normal(km, (1, dim), jnp.float32)
        var = 1.0 + 0.1 * jax.random.uniform(kv, (1, dim), jnp.float32)
        return gamma, beta, mean, var

    g1, be1, m1, v1 = bn(next(k_iter), next(k_iter), next(k_iter), next(k_iter), h1)
    g2, be2, m2, v2 = bn(next(k_iter), next(k_iter), next(k_iter), next(k_iter), h2)

    raw_mlp = (w1, b1, g1, be1, m1, v1,
               w2, b2, g2, be2, m2, v2,
               w3, b3)
    return emb_tables, raw_mlp, input_dim


def fold_and_pad_params(raw_mlp, input_dim, hidden_dims, num_classes):
    """Fold eval-mode BatchNorm into the Linears, zero-pad to 128-lane shapes,
    cast weights to bf16.  Returns (kernel_params, (in_pad, out_pad))."""
    (w1, b1, g1, be1, m1, v1,
     w2, b2, g2, be2, m2, v2,
     w3, b3) = raw_mlp
    h1, h2 = hidden_dims

    def fold(w, b, gamma, beta, mean, var):
        scale = gamma * jax.lax.rsqrt(var + BN_EPS)          # (1, out)
        return w * scale, (b - mean) * scale + beta

    w1f, b1f = fold(w1, b1, g1, be1, m1, v1)
    w2f, b2f = fold(w2, b2, g2, be2, m2, v2)

    in_pad = _round_up(input_dim, LANE)
    h1_pad = _round_up(h1, LANE)
    h2_pad = _round_up(h2, LANE)
    out_pad = _round_up(num_classes, LANE)

    def pad2(a, rows, cols):
        return jnp.pad(a, ((0, rows - a.shape[0]), (0, cols - a.shape[1])))

    kernel_params = (
        pad2(w1f, in_pad, h1_pad).astype(jnp.bfloat16),
        pad2(b1f, 1, h1_pad),
        pad2(w2f, h1_pad, h2_pad).astype(jnp.bfloat16),
        pad2(b2f, 1, h2_pad),
        pad2(w3, h2_pad, out_pad).astype(jnp.bfloat16),
        pad2(b3, 1, out_pad),
    )
    return kernel_params, (in_pad, out_pad)


def pack_table(emb_tables, cat_embedding_dims, num_numeric, in_pad):
    """Pack all embedding tables (plus identity rows for the numeric features)
    into one [card_pad, in_pad] bf16 table so the in-kernel multi-hot matmul
    produces the concatenated (and 128-lane padded) MLP input directly."""
    pieces, row_offsets = [], []
    row, col = 0, 0
    for tbl, d in zip(emb_tables, cat_embedding_dims):
        card = tbl.shape[0]
        row_offsets.append(row)
        pieces.append(jnp.zeros((card, in_pad), jnp.float32).at[:, col:col + d].set(tbl))
        row += card
        col += d
    total_emb_dim = col
    num_row_base = row
    ident = jnp.zeros((num_numeric, in_pad), jnp.float32)
    ident = ident.at[jnp.arange(num_numeric),
                     total_emb_dim + jnp.arange(num_numeric)].set(1.0)
    pieces.append(ident)
    table = jnp.concatenate(pieces, axis=0)
    card_pad = _round_up(table.shape[0], LANE)
    table = jnp.pad(table, ((0, card_pad - table.shape[0]), (0, 0))).astype(jnp.bfloat16)
    return table, tuple(row_offsets), num_row_base, total_emb_dim


# ------------------------------ references -----------------------------------
def _reference_forward_f32(x_cat, x_num, emb_tables, raw_mlp):
    """Pure-JAX f32 reference with the original (unfolded) module semantics."""
    (w1, b1, g1, be1, m1, v1,
     w2, b2, g2, be2, m2, v2,
     w3, b3) = raw_mlp
    embedded = [jnp.take(tbl, x_cat[:, i], axis=0)
                for i, tbl in enumerate(emb_tables)]
    x = jnp.concatenate(embedded + [x_num.astype(jnp.float32)], axis=1)

    def lrelu(h):
        return jnp.where(h >= 0.0, h, NEG_SLOPE * h)

    h = x @ w1 + b1
    h = (h - m1) / jnp.sqrt(v1 + BN_EPS) * g1 + be1
    h = lrelu(h)
    h = h @ w2 + b2
    h = (h - m2) / jnp.sqrt(v2 + BN_EPS) * g2 + be2
    h = lrelu(h)
    return h @ w3 + b3


def _reference_forward_matched(x_cat, x_num, emb_tables, kernel_params, num_classes):
    """Pure-JAX reference mirroring the kernel's bf16 quantization of weights,
    embedding entries and numeric features (f32 accumulation)."""
    w1, b1, w2, b2, w3, b3 = kernel_params
    emb = [jnp.take(tbl.astype(jnp.bfloat16).astype(jnp.float32), x_cat[:, i], axis=0)
           for i, tbl in enumerate(emb_tables)]
    x = jnp.concatenate(emb + [x_num.astype(jnp.bfloat16).astype(jnp.float32)], axis=1)
    in_pad = w1.shape[0]
    x = jnp.pad(x, ((0, 0), (0, in_pad - x.shape[1]))).astype(jnp.bfloat16)

    def lrelu(h):
        return jnp.where(h >= 0.0, h, NEG_SLOPE * h)

    h = lrelu(jnp.dot(x, w1, preferred_element_type=jnp.float32) + b1)
    h = lrelu(jnp.dot(h.astype(jnp.bfloat16), w2,
                      preferred_element_type=jnp.float32) + b2)
    out = jnp.dot(h.astype(jnp.bfloat16), w3,
                  preferred_element_type=jnp.float32) + b3
    return out[:, :num_classes]


# --------------------------------- main ---------------------------------------
if __name__ == "__main__":
    cat_cardinalities = [10, 7, 3, 12, 9, 5, 4, 11]            # 8 categorical features
    cat_embedding_dims = [17, 14, 2, 18, 16, 16, 10, 17]       # module default
    num_numeric_features = 6
    hidden_dims = [128, 64]
    num_classes = 3
    batch = 8

    key = jax.random.PRNGKey(0)
    k_params, k_cat, k_num = jax.random.split(key, 3)

    emb_tables, raw_mlp, input_dim = make_params(
        k_params, cat_cardinalities, cat_embedding_dims,
        num_numeric_features, hidden_dims, num_classes)

    kernel_params, (in_pad, out_pad) = fold_and_pad_params(
        raw_mlp, input_dim, hidden_dims, num_classes)
    packed_table, row_offsets, num_row_base, total_emb_dim = pack_table(
        emb_tables, cat_embedding_dims, num_numeric_features, in_pad)

    # deterministic example inputs
    cat_keys = jax.random.split(k_cat, len(cat_cardinalities))
    x_cat = jnp.stack(
        [jax.random.randint(ck, (batch,), 0, card, dtype=jnp.int32)
         for ck, card in zip(cat_keys, cat_cardinalities)], axis=1)   # [B, 8]
    x_num = jax.random.normal(k_num, (batch, num_numeric_features), jnp.float32)

    out = tabular_forward_pallas(x_cat, x_num, packed_table, kernel_params,
                                 row_offsets, num_row_base, num_classes)
    out = jax.block_until_ready(out)
    assert out.shape == (batch, num_classes)

    # tight check vs a pure-JAX path using the same bf16-quantized params
    ref_m = _reference_forward_matched(x_cat, x_num, emb_tables, kernel_params,
                                       num_classes)
    assert jnp.allclose(out, ref_m, atol=2e-2, rtol=2e-2), \
        "Pallas output mismatch vs bf16-matched reference"

    # loose check vs the true f32 module semantics (intentional bf16 quantization
    # of weights, embedding entries, numeric features and the output)
    ref_f32 = _reference_forward_f32(x_cat, x_num, emb_tables, raw_mlp)
    assert jnp.allclose(out, ref_f32, atol=5e-2, rtol=5e-2), \
        "Pallas output mismatch vs f32 reference"

    print("KERNEL_OK")
</pallas_src>

<mosaic_0001>
module attributes {stable_mosaic.version = 11 : i64} {
  func.func @_fused_kernel(%arg0: i32, %arg1: memref<16x8xi32, #tpu.memory_space<vmem>>, %arg2: memref<16x6xf32, #tpu.memory_space<vmem>>, %arg3: memref<128x128xbf16, #tpu.memory_space<vmem>>, %arg4: memref<128x128xbf16, #tpu.memory_space<vmem>>, %arg5: memref<1x128xf32, #tpu.memory_space<vmem>>, %arg6: memref<128x128xbf16, #tpu.memory_space<vmem>>, %arg7: memref<1x128xf32, #tpu.memory_space<vmem>>, %arg8: memref<128x128xbf16, #tpu.memory_space<vmem>>, %arg9: memref<1x128xf32, #tpu.memory_space<vmem>>, %arg10: memref<16x128xbf16, #tpu.memory_space<vmem>>) attributes {dimension_semantics = [#tpu.dimension_semantics<parallel>], iteration_bounds = array<i64: 1>, scalar_prefetch = 0 : i64, scratch_operands = 0 : i64, tpu.core_type = #tpu.core_type<tc>, window_params = [{transform_indices = @transform_0, window_bounds = array<i64: 16, 8>}, {transform_indices = @transform_1, window_bounds = array<i64: 16, 6>}, {pipeline_mode = #tpu.pipeline_mode<synchronous>, transform_indices = @transform_2, window_bounds = array<i64: 128, 128>}, {pipeline_mode = #tpu.pipeline_mode<synchronous>, transform_indices = @transform_3, window_bounds = array<i64: 128, 128>}, {pipeline_mode = #tpu.pipeline_mode<synchronous>, transform_indices = @transform_4, window_bounds = array<i64: 1, 128>}, {pipeline_mode = #tpu.pipeline_mode<synchronous>, transform_indices = @transform_5, window_bounds = array<i64: 128, 128>}, {pipeline_mode = #tpu.pipeline_mode<synchronous>, transform_indices = @transform_6, window_bounds = array<i64: 1, 128>}, {pipeline_mode = #tpu.pipeline_mode<synchronous>, transform_indices = @transform_7, window_bounds = array<i64: 128, 128>}, {pipeline_mode = #tpu.pipeline_mode<synchronous>, transform_indices = @transform_8, window_bounds = array<i64: 1, 128>}, {transform_indices = @transform_9, window_bounds = array<i64: 16, 128>}]} {
    %c0 = arith.constant 0 : index
    %c0_0 = arith.constant 0 : index
    %0 = vector.load %arg1[%c0, %c0_0] : memref<16x8xi32, #tpu.memory_space<vmem>>, vector<16x8xi32>
    %c0_1 = arith.constant 0 : index
    %c0_2 = arith.constant 0 : index
    %1 = vector.load %arg2[%c0_1, %c0_2] : memref<16x6xf32, #tpu.memory_space<vmem>>, vector<16x6xf32>
    %2 = tpu.iota {dimensions = array<i32: 1>} : vector<16x128xi32>
    %cst = arith.constant 0.000000e+00 : f32
    %3 = vector.broadcast %cst : f32 to vector<16x128xf32>
    %4 = vector.extract_strided_slice %0 {offsets = [0, 0], sizes = [16, 1], strides = [1, 1]} : vector<16x8xi32> to vector<16x1xi32>
    %c0_i32 = arith.constant 0 : i32
    %5 = vector.broadcast %c0_i32 : i32 to vector<16x1xi32>
    %6 = arith.addi %4, %5 : vector<16x1xi32>
    %7 = vector.broadcast %6 : vector<16x1xi32> to vector<16x128xi32>
    %8 = arith.cmpi eq, %2, %7 : vector<16x128xi32>
    %9 = arith.extui %8 : vector<16x128xi1> to vector<16x128xi32>
    %10 = arith.sitofp %9 : vector<16x128xi32> to vector<16x128xf32>
    %11 = arith.addf %3, %10 : vector<16x128xf32>
    %12 = vector.extract_strided_slice %0 {offsets = [0, 1], sizes = [16, 1], strides = [1, 1]} : vector<16x8xi32> to vector<16x1xi32>
    %c10_i32 = arith.constant 10 : i32
    %13 = vector.broadcast %c10_i32 : i32 to vector<16x1xi32>
    %14 = arith.addi %12, %13 : vector<16x1xi32>
    %15 = vector.broadcast %14 : vector<16x1xi32> to vector<16x128xi32>
    %16 = arith.cmpi eq, %2, %15 : vector<16x128xi32>
    %17 = arith.extui %16 : vector<16x128xi1> to vector<16x128xi32>
    %18 = arith.sitofp %17 : vector<16x128xi32> to vector<16x128xf32>
    %19 = arith.addf %11, %18 : vector<16x128xf32>
    %20 = vector.extract_strided_slice %0 {offsets = [0, 2], sizes = [16, 1], strides = [1, 1]} : vector<16x8xi32> to vector<16x1xi32>
    %c17_i32 = arith.constant 17 : i32
    %21 = vector.broadcast %c17_i32 : i32 to vector<16x1xi32>
    %22 = arith.addi %20, %21 : vector<16x1xi32>
    %23 = vector.broadcast %22 : vector<16x1xi32> to vector<16x128xi32>
    %24 = arith.cmpi eq, %2, %23 : vector<16x128xi32>
    %25 = arith.extui %24 : vector<16x128xi1> to vector<16x128xi32>
    %26 = arith.sitofp %25 : vector<16x128xi32> to vector<16x128xf32>
    %27 = arith.addf %19, %26 : vector<16x128xf32>
    %28 = vector.extract_strided_slice %0 {offsets = [0, 3], sizes = [16, 1], strides = [1, 1]} : vector<16x8xi32> to vector<16x1xi32>
    %c20_i32 = arith.constant 20 : i32
    %29 = vector.broadcast %c20_i32 : i32 to vector<16x1xi32>
    %30 = arith.addi %28, %29 : vector<16x1xi32>
    %31 = vector.broadcast %30 : vector<16x1xi32> to vector<16x128xi32>
    %32 = arith.cmpi eq, %2, %31 : vector<16x128xi32>
    %33 = arith.extui %32 : vector<16x128xi1> to vector<16x128xi32>
    %34 = arith.sitofp %33 : vector<16x128xi32> to vector<16x128xf32>
    %35 = arith.addf %27, %34 : vector<16x128xf32>
    %36 = vector.extract_strided_slice %0 {offsets = [0, 4], sizes = [16, 1], strides = [1, 1]} : vector<16x8xi32> to vector<16x1xi32>
    %c32_i32 = arith.constant 32 : i32
    %37 = vector.broadcast %c32_i32 : i32 to vector<16x1xi32>
    %38 = arith.addi %36, %37 : vector<16x1xi32>
    %39 = vector.broadcast %38 : vector<16x1xi32> to vector<16x128xi32>
    %40 = arith.cmpi eq, %2, %39 : vector<16x128xi32>
    %41 = arith.extui %40 : vector<16x128xi1> to vector<16x128xi32>
    %42 = arith.sitofp %41 : vector<16x128xi32> to vector<16x128xf32>
    %43 = arith.addf %35, %42 : vector<16x128xf32>
    %44 = vector.extract_strided_slice %0 {offsets = [0, 5], sizes = [16, 1], strides = [1, 1]} : vector<16x8xi32> to vector<16x1xi32>
    %c41_i32 = arith.constant 41 : i32
    %45 = vector.broadcast %c41_i32 : i32 to vector<16x1xi32>
    %46 = arith.addi %44, %45 : vector<16x1xi32>
    %47 = vector.broadcast %46 : vector<16x1xi32> to vector<16x128xi32>
    %48 = arith.cmpi eq, %2, %47 : vector<16x128xi32>
    %49 = arith.extui %48 : vector<16x128xi1> to vector<16x128xi32>
    %50 = arith.sitofp %49 : vector<16x128xi32> to vector<16x128xf32>
    %51 = arith.addf %43, %50 : vector<16x128xf32>
    %52 = vector.extract_strided_slice %0 {offsets = [0, 6], sizes = [16, 1], strides = [1, 1]} : vector<16x8xi32> to vector<16x1xi32>
    %c46_i32 = arith.constant 46 : i32
    %53 = vector.broadcast %c46_i32 : i32 to vector<16x1xi32>
    %54 = arith.addi %52, %53 : vector<16x1xi32>
    %55 = vector.broadcast %54 : vector<16x1xi32> to vector<16x128xi32>
    %56 = arith.cmpi eq, %2, %55 : vector<16x128xi32>
    %57 = arith.extui %56 : vector<16x128xi1> to vector<16x128xi32>
    %58 = arith.sitofp %57 : vector<16x128xi32> to vector<16x128xf32>
    %59 = arith.addf %51, %58 : vector<16x128xf32>
    %60 = vector.extract_strided_slice %0 {offsets = [0, 7], sizes = [16, 1], strides = [1, 1]} : vector<16x8xi32> to vector<16x1xi32>
    %c50_i32 = arith.constant 50 : i32
    %61 = vector.broadcast %c50_i32 : i32 to vector<16x1xi32>
    %62 = arith.addi %60, %61 : vector<16x1xi32>
    %63 = vector.broadcast %62 : vector<16x1xi32> to vector<16x128xi32>
    %64 = arith.cmpi eq, %2, %63 : vector<16x128xi32>
    %65 = arith.extui %64 : vector<16x128xi1> to vector<16x128xi32>
    %66 = arith.sitofp %65 : vector<16x128xi32> to vector<16x128xf32>
    %67 = arith.addf %59, %66 : vector<16x128xf32>
    %c61_i32 = arith.constant 61 : i32
    %68 = vector.broadcast %c61_i32 : i32 to vector<16x128xi32>
    %69 = arith.cmpi eq, %2, %68 : vector<16x128xi32>
    %70 = vector.extract_strided_slice %1 {offsets = [0, 0], sizes = [16, 1], strides = [1, 1]} : vector<16x6xf32> to vector<16x1xf32>
    %71 = vector.shape_cast %70 : vector<16x1xf32> to vector<16x1xf32>
    %72 = vector.broadcast %71 : vector<16x1xf32> to vector<16x128xf32>
    %73 = arith.select %69, %72, %67 : vector<16x128xi1>, vector<16x128xf32>
    %c62_i32 = arith.constant 62 : i32
    %74 = vector.broadcast %c62_i32 : i32 to vector<16x128xi32>
    %75 = arith.cmpi eq, %2, %74 : vector<16x128xi32>
    %76 = vector.extract_strided_slice %1 {offsets = [0, 1], sizes = [16, 1], strides = [1, 1]} : vector<16x6xf32> to vector<16x1xf32>
    %77 = vector.shape_cast %76 : vector<16x1xf32> to vector<16x1xf32>
    %78 = vector.broadcast %77 : vector<16x1xf32> to vector<16x128xf32>
    %79 = arith.select %75, %78, %73 : vector<16x128xi1>, vector<16x128xf32>
    %c63_i32 = arith.constant 63 : i32
    %80 = vector.broadcast %c63_i32 : i32 to vector<16x128xi32>
    %81 = arith.cmpi eq, %2, %80 : vector<16x128xi32>
    %82 = vector.extract_strided_slice %1 {offsets = [0, 2], sizes = [16, 1], strides = [1, 1]} : vector<16x6xf32> to vector<16x1xf32>
    %83 = vector.shape_cast %82 : vector<16x1xf32> to vector<16x1xf32>
    %84 = vector.broadcast %83 : vector<16x1xf32> to vector<16x128xf32>
    %85 = arith.select %81, %84, %79 : vector<16x128xi1>, vector<16x128xf32>
    %c64_i32 = arith.constant 64 : i32
    %86 = vector.broadcast %c64_i32 : i32 to vector<16x128xi32>
    %87 = arith.cmpi eq, %2, %86 : vector<16x128xi32>
    %88 = vector.extract_strided_slice %1 {offsets = [0, 3], sizes = [16, 1], strides = [1, 1]} : vector<16x6xf32> to vector<16x1xf32>
    %89 = vector.shape_cast %88 : vector<16x1xf32> to vector<16x1xf32>
    %90 = vector.broadcast %89 : vector<16x1xf32> to vector<16x128xf32>
    %91 = arith.select %87, %90, %85 : vector<16x128xi1>, vector<16x128xf32>
    %c65_i32 = arith.constant 65 : i32
    %92 = vector.broadcast %c65_i32 : i32 to vector<16x128xi32>
    %93 = arith.cmpi eq, %2, %92 : vector<16x128xi32>
    %94 = vector.extract_strided_slice %1 {offsets = [0, 4], sizes = [16, 1], strides = [1, 1]} : vector<16x6xf32> to vector<16x1xf32>
    %95 = vector.shape_cast %94 : vector<16x1xf32> to vector<16x1xf32>
    %96 = vector.broadcast %95 : vector<16x1xf32> to vector<16x128xf32>
    %97 = arith.select %93, %96, %91 : vector<16x128xi1>, vector<16x128xf32>
    %c66_i32 = arith.constant 66 : i32
    %98 = vector.broadcast %c66_i32 : i32 to vector<16x128xi32>
    %99 = arith.cmpi eq, %2, %98 : vector<16x128xi32>
    %100 = vector.extract_strided_slice %1 {offsets = [0, 5], sizes = [16, 1], strides = [1, 1]} : vector<16x6xf32> to vector<16x1xf32>
    %101 = vector.shape_cast %100 : vector<16x1xf32> to vector<16x1xf32>
    %102 = vector.broadcast %101 : vector<16x1xf32> to vector<16x128xf32>
    %103 = arith.select %99, %102, %97 : vector<16x128xi1>, vector<16x128xf32>
    %104 = arith.truncf %103 : vector<16x128xf32> to vector<16x128xbf16>
    %c0_3 = arith.constant 0 : index
    %c0_4 = arith.constant 0 : index
    %105 = vector.load %arg3[%c0_3, %c0_4] : memref<128x128xbf16, #tpu.memory_space<vmem>>, vector<128x128xbf16>
    %cst_5 = arith.constant dense<0.000000e+00> : vector<16x128xf32>
    %106 = tpu.matmul %104, %105, %cst_5 {dimension_numbers = #tpu.dot_dimension_numbers<[1], [0], [0], [1], [0, 0, 1, 1], [], []>} : vector<16x128xbf16>, vector<128x128xbf16>, vector<16x128xf32> -> vector<16x128xf32>
    %107 = arith.truncf %106 : vector<16x128xf32> to vector<16x128xbf16>
    %c0_6 = arith.constant 0 : index
    %c0_7 = arith.constant 0 : index
    %108 = vector.load %arg4[%c0_6, %c0_7] : memref<128x128xbf16, #tpu.memory_space<vmem>>, vector<128x128xbf16>
    %cst_8 = arith.constant dense<0.000000e+00> : vector<16x128xf32>
    %109 = tpu.matmul %107, %108, %cst_8 {dimension_numbers = #tpu.dot_dimension_numbers<[1], [0], [0], [1], [0, 0, 1, 1], [], []>} : vector<16x128xbf16>, vector<128x128xbf16>, vector<16x128xf32> -> vector<16x128xf32>
    %c0_9 = arith.constant 0 : index
    %c0_10 = arith.constant 0 : index
    %110 = vector.load %arg5[%c0_9, %c0_10] : memref<1x128xf32, #tpu.memory_space<vmem>>, vector<1x128xf32>
    %111 = vector.broadcast %110 : vector<1x128xf32> to vector<16x128xf32>
    %112 = arith.addf %109, %111 : vector<16x128xf32>
    %cst_11 = arith.constant 0.000000e+00 : f32
    %113 = vector.broadcast %cst_11 : f32 to vector<16x128xf32>
    %114 = arith.cmpf oge, %112, %113 : vector<16x128xf32>
    %cst_12 = arith.constant 0.00999999977 : f32
    %115 = vector.broadcast %cst_12 : f32 to vector<16x128xf32>
    %116 = arith.mulf %115, %112 : vector<16x128xf32>
    %117 = arith.select %114, %112, %116 : vector<16x128xi1>, vector<16x128xf32>
    %118 = arith.truncf %117 : vector<16x128xf32> to vector<16x128xbf16>
    %c0_13 = arith.constant 0 : index
    %c0_14 = arith.constant 0 : index
    %119 = vector.load %arg6[%c0_13, %c0_14] : memref<128x128xbf16, #tpu.memory_space<vmem>>, vector<128x128xbf16>
    %cst_15 = arith.constant dense<0.000000e+00> : vector<16x128xf32>
    %120 = tpu.matmul %118, %119, %cst_15 {dimension_numbers = #tpu.dot_dimension_numbers<[1], [0], [0], [1], [0, 0, 1, 1], [], []>} : vector<16x128xbf16>, vector<128x128xbf16>, vector<16x128xf32> -> vector<16x128xf32>
    %c0_16 = arith.constant 0 : index
    %c0_17 = arith.constant 0 : index
    %121 = vector.load %arg7[%c0_16, %c0_17] : memref<1x128xf32, #tpu.memory_space<vmem>>, vector<1x128xf32>
    %122 = vector.broadcast %121 : vector<1x128xf32> to vector<16x128xf32>
    %123 = arith.addf %120, %122 : vector<16x128xf32>
    %cst_18 = arith.constant 0.000000e+00 : f32
    %124 = vector.broadcast %cst_18 : f32 to vector<16x128xf32>
    %125 = arith.cmpf oge, %123, %124 : vector<16x128xf32>
    %cst_19 = arith.constant 0.00999999977 : f32
    %126 = vector.broadcast %cst_19 : f32 to vector<16x128xf32>
    %127 = arith.mulf %126, %123 : vector<16x128xf32>
    %128 = arith.select %125, %123, %127 : vector<16x128xi1>, vector<16x128xf32>
    %129 = arith.truncf %128 : vector<16x128xf32> to vector<16x128xbf16>
    %c0_20 = arith.constant 0 : index
    %c0_21 = arith.constant 0 : index
    %130 = vector.load %arg8[%c0_20, %c0_21] : memref<128x128xbf16, #tpu.memory_space<vmem>>, vector<128x128xbf16>
    %cst_22 = arith.constant dense<0.000000e+00> : vector<16x128xf32>
    %131 = tpu.matmul %129, %130, %cst_22 {dimension_numbers = #tpu.dot_dimension_numbers<[1], [0], [0], [1], [0, 0, 1, 1], [], []>} : vector<16x128xbf16>, vector<128x128xbf16>, vector<16x128xf32> -> vector<16x128xf32>
    %c0_23 = arith.constant 0 : index
    %c0_24 = arith.constant 0 : index
    %132 = vector.load %arg9[%c0_23, %c0_24] : memref<1x128xf32, #tpu.memory_space<vmem>>, vector<1x128xf32>
    %133 = vector.broadcast %132 : vector<1x128xf32> to vector<16x128xf32>
    %134 = arith.addf %131, %133 : vector<16x128xf32>
    %135 = arith.truncf %134 : vector<16x128xf32> to vector<16x128xbf16>
    %c0_25 = arith.constant 0 : index
    %c0_26 = arith.constant 0 : index
    %136 = vector.load %arg10[%c0_25, %c0_26] : memref<16x128xbf16, #tpu.memory_space<vmem>>, vector<16x128xbf16>
    tpu.vector_store %arg10[%c0_25, %c0_26], %135 {strides = array<i32>} : memref<16x128xbf16, #tpu.memory_space<vmem>>, vector<16x128xbf16>,
    return
  }
  func.func @transform_0(%arg0: i32) -> (i32, i32) {
    %c0_i32 = arith.constant 0 : i32
    %c0_i32_0 = arith.constant 0 : i32
    return %arg0, %c0_i32 : i32, i32
  }
  func.func @transform_1(%arg0: i32) -> (i32, i32) {
    %c0_i32 = arith.constant 0 : i32
    %c0_i32_0 = arith.constant 0 : i32
    return %arg0, %c0_i32 : i32, i32
  }
  func.func @transform_2(%arg0: i32) -> (i32, i32) {
    %c0_i32 = arith.constant 0 : i32
    %c0_i32_0 = arith.constant 0 : i32
    %c0_i32_1 = arith.constant 0 : i32
    return %c0_i32, %c0_i32_0 : i32, i32
  }
  func.func @transform_3(%arg0: i32) -> (i32, i32) {
    %c0_i32 = arith.constant 0 : i32
    %c0_i32_0 = arith.constant 0 : i32
    %c0_i32_1 = arith.constant 0 : i32
    return %c0_i32, %c0_i32_0 : i32, i32
  }
  func.func @transform_4(%arg0: i32) -> (i32, i32) {
    %c0_i32 = arith.constant 0 : i32
    %c0_i32_0 = arith.constant 0 : i32
    %c0_i32_1 = arith.constant 0 : i32
    return %c0_i32, %c0_i32_0 : i32, i32
  }
  func.func @transform_5(%arg0: i32) -> (i32, i32) {
    %c0_i32 = arith.constant 0 : i32
    %c0_i32_0 = arith.constant 0 : i32
    %c0_i32_1 = arith.constant 0 : i32
    return %c0_i32, %c0_i32_0 : i32, i32
  }
  func.func @transform_6(%arg0: i32) -> (i32, i32) {
    %c0_i32 = arith.constant 0 : i32
    %c0_i32_0 = arith.constant 0 : i32
    %c0_i32_1 = arith.constant 0 : i32
    return %c0_i32, %c0_i32_0 : i32, i32
  }
  func.func @transform_7(%arg0: i32) -> (i32, i32) {
    %c0_i32 = arith.constant 0 : i32
    %c0_i32_0 = arith.constant 0 : i32
    %c0_i32_1 = arith.constant 0 : i32
    return %c0_i32, %c0_i32_0 : i32, i32
  }
  func.func @transform_8(%arg0: i32) -> (i32, i32) {
    %c0_i32 = arith.constant 0 : i32
    %c0_i32_0 = arith.constant 0 : i32
    %c0_i32_1 = arith.constant 0 : i32
    return %c0_i32, %c0_i32_0 : i32, i32
  }
  func.func @transform_9(%arg0: i32) -> (i32, i32) {
    %c0_i32 = arith.constant 0 : i32
    %c0_i32_0 = arith.constant 0 : i32
    return %arg0, %c0_i32 : i32, i32
  }
}

</mosaic_0001>

<bundles_post_ra>
// kernel: tpu_custom_call.1
= control target key start
LH: loop header
LB: loop body
LE: loop exit
PB: predicated region body
PF: predicated region fallthrough
CT: control target
= control target key end

     0   :  { %14 = vsyncpa [#allocation3], 0  ;;  %s1387_s0 = inlined_call_operand.vmem [shape: s32[16,8], index: 0, kind: input, shape index: {}]   ;;  %s1388_s1 = inlined_call_operand.vmem [shape: f32[16,6], index: 1, kind: input, shape index: {}]   ;;  %s1389_s2 = inlined_call_operand.hbm [shape: bf16[128,128], index: 2, kind: input, shape index: {}]   ;;  %s1390_s3 = inlined_call_operand.hbm [shape: bf16[128,128], index: 3, kind: input, shape index: {}]   ;;  %s1391_s4 = inlined_call_operand.vmem [shape: f32[1,128], index: 4, kind: input, shape index: {}]   ;;  %s1392_s5 = inlined_call_operand.vmem [shape: bf16[128,128], index: 5, kind: input, shape index: {}]   ;;  %s1393_s6 = inlined_call_operand.vmem [shape: f32[1,128], index: 6, kind: input, shape index: {}]   ;;  %s1394_s7 = inlined_call_operand.hbm [shape: bf16[128,128], index: 7, kind: input, shape index: {}]   ;;  %s1395_s8 = inlined_call_operand.vmem [shape: f32[1,128], index: 8, kind: input, shape index: {}]   ;;  %s1396_s9 = inlined_call_operand.hbm [shape: bf16[16,128], index: 9, kind: output, shape index: {}]  }
   0x1   :  { %15 = vsyncpa [#allocation6], 0 }
   0x2   :  { %16 = vsyncpa [#allocation4], 0  ;;  %s1127_s30 = smov [#allocation5]   ;;  %s1128_s11 = smov [#allocation2]  }
   0x3   :  { %s38_s10 = sshll.u32 %s1127_s30, 4  ;;  %s26_s12 = sshll.u32 %s1128_s11, 4  ;;  %s39_s10 = int_to_ptr.vmem [resolvable:$true] %s38_s10  ;;  %s1193_s12 = int_to_ptr.vmem [resolvable:$true] %s26_s12 }
   0x4   :  { %s1033_s15 = scalar_lea.hbm %s1390_s3, 1024 }
   0x5   :  { %p1034_p0 = scmp.ne.s32.totalorder %s1390_s3, %s1033_s15  ;;  %p1037_p1 = scmp.lt.u32.totalorder %s1033_s15, %s1390_s3 }
   0x7   :  { %p1039_p2 = pnand %p1037_p1, %p1034_p0 }
   0x9   :  { %1042 = shalt.err (!%p1039_p2)
}
   0xa   :  { %s1043_s20 = scalar_lea.vmem %s39_s10, 1024  ;;  %p1048_p4 = scmp.lt.s32.totalorder %s39_s10, %s39_s10 }
   0xb   :  { %p1044_p3 = scmp.ne.s32.totalorder %s39_s10, %s1043_s20  ;;  %p1049_p5 = scmp.lt.s32.totalorder %s1043_s20, %s1043_s20 }
   0xd   :  { %p1050_p6 = por %p1049_p5, %p1048_p4 }
   0xf   :  { %p1051_p7 = pnand %p1050_p6, %p1044_p3 }
  0x11   :  { %1054 = shalt.err (!%p1051_p7)
}
  0x12   :  { %s1129_s21 = smov 64   ;;  %s1130_s22 = smov 4  }
  0x13   :  { %44 = dma.hbm_to_vmem [thread:$0]  %s1390_s3, 1024, %s39_s10, [#allocation6], %s1129_s21, %s1129_s21, %s1130_s22  }
  0x14   :  { %s1055_s27 = scalar_lea.hbm %s1389_s2, 1024 }
  0x15   :  { %p1056_p8 = scmp.ne.s32.totalorder %s1389_s2, %s1055_s27  ;;  %p1059_p9 = scmp.lt.u32.totalorder %s1055_s27, %s1389_s2 }
  0x17   :  { %p1061_p10 = pnand %p1059_p9, %p1056_p8 }
  0x19   :  { %1064 = shalt.err (!%p1061_p10)
}
  0x1a   :  { %s1065_s13 = scalar_lea.vmem %s1193_s12, 1024  ;;  %p1070_p12 = scmp.lt.s32.totalorder %s1193_s12, %s1193_s12 }
  0x1b   :  { %p1066_p11 = scmp.ne.s32.totalorder %s1193_s12, %s1065_s13  ;;  %p1071_p13 = scmp.lt.s32.totalorder %s1065_s13, %s1065_s13 }
  0x1d   :  { %p1072_p0 = por %p1071_p13, %p1070_p12 }
  0x1f   :  { %p1073_p1 = pnand %p1072_p0, %p1066_p11 }
  0x21   :  { %1076 = shalt.err (!%p1073_p1)
}
  0x22   :  { %32 = dma.hbm_to_vmem [thread:$0]  %s1389_s2, 1024, %s1193_s12, [#allocation3], %s1129_s21, %s1129_s21, %s1130_s22  }
  0x23   :  { %s1131_s14 = smov [#allocation7]   ;;  %s1077_s18 = scalar_lea.hbm %s1394_s7, 1024 }
  0x24   :  { %s56_s15 = sshll.u32 %s1131_s14, 4  ;;  %p1078_p2 = scmp.ne.s32.totalorder %s1394_s7, %s1077_s18  ;;  %s57_s15 = int_to_ptr.vmem [resolvable:$true] %s56_s15 }
  0x25   :  { %p1081_p3 = scmp.lt.u32.totalorder %s1077_s18, %s1394_s7 }
  0x27   :  { %p1083_p4 = pnand %p1081_p3, %p1078_p2 }
  0x29   :  { %1086 = shalt.err (!%p1083_p4)
}
  0x2a   :  { %s1087_s25 = scalar_lea.vmem %s57_s15, 1024  ;;  %p1092_p6 = scmp.lt.s32.totalorder %s57_s15, %s57_s15 }
  0x2b   :  { %p1088_p5 = scmp.ne.s32.totalorder %s57_s15, %s1087_s25  ;;  %p1093_p7 = scmp.lt.s32.totalorder %s1087_s25, %s1087_s25 }
  0x2d   :  { %p1094_p8 = por %p1093_p7, %p1092_p6 }
  0x2f   :  { %p1095_p9 = pnand %p1094_p8, %p1088_p5 }
  0x31   :  { %1098 = shalt.err (!%p1095_p9)
}
  0x32   :  { %62 = dma.hbm_to_vmem [thread:$0]  %s1394_s7, 1024, %s57_s15, [#allocation6], %s1129_s21, %s1129_s21, %s1130_s22  }
  0x33   :  { %1121 = dma.done.wait [#allocation3], 1024  }
  0x34   :  { %1122 = vsyncadd [#allocation3], 4294966272 }
  0x35   :  { %1123 = dma.done.wait [#allocation6], 2048  }
  0x36   :  { %1124 = vsyncadd [#allocation6], 4294965248  ;;  %v1132_v0 = vmov 0   ;;  %v1133_v1 = vmov 1   ;;  %v1134_v2 = vmov 0.0   ;;  %v75_v3 = vld [vmem:[%s1387_s0] sm:$0xff]  ;;  %v79_v51 = vlaneseq }
  0x37   :  { %952 = vset.pattern.permute.xlu0 %v1132_v0  ;;  %953 = vset.pattern.permute.xlu1 %v1133_v1  ;;  %v76_v4 = vld [vmem:[%s1387_s0 + $0x8] sm:$0xff]  ;;  %v95_v5 = vadd.s32 10, %v75_v3  ;;  %v111_v7 = vadd.s32 17, %v75_v3  ;;  %v127_v10 = vadd.s32 20, %v75_v3  ;;  %v143_v11 = vadd.s32 32, %v75_v3  ;;  %v77_v19 = vld [vmem:[%s1388_s1] sm:$0xff] }
  0x38   :  { %856 = vmatprep.subr.bf16.mxu0 %v1134_v2  ;;  %876 = vmatprep.subr.bf16.mxu1 %v1134_v2  ;;  %v96_v6 = vadd.s32 10, %v76_v4  ;;  %v112_v8 = vadd.s32 17, %v76_v4  ;;  %v128_v9 = vadd.s32 20, %v76_v4  ;;  %v159_v12 = vadd.s32 41, %v75_v3  ;;  %v78_v20 = vld [vmem:[%s1388_s1 + $0x8] sm:$0xff]  ;;  %v1001_v26 = vld [vmem:[#allocation2] sm:$0xff]  }
  0x39   :  { %82 = vperm.xlu0 %952, %v75_v3   ;;  %98 = vperm.xlu1 %953, %v95_v5   ;;  %v144_v13 = vadd.s32 32, %v76_v4  ;;  %v176_v14 = vadd.s32 46, %v76_v4  ;;  %v1135_v15 = vmov 2   ;;  %v1136_v16 = vmov 3   ;;  %v1002_v29 = vld [vmem:[#allocation2 + $0x8] sm:$0xff]   ;;  %v1003_v30 = vld [vmem:[#allocation2 + $0x10] sm:$0xff]  }
  0x3a   :  { %v1137_v17 = vmov 5   ;;  %v1138_v18 = vmov 4   ;;  %v1139_v21 = vmov 6   ;;  %v965_v22 = vpack.i.bf16 %v78_v20, %v77_v19  ;;  %857 = vmatpush3.bf16.msra.mxu0 %v1001_v26  ;;  %v1004_v31 = vld [vmem:[#allocation2 + $0x18] sm:$0xff]   ;;  %v1005_v32 = vld [vmem:[#allocation2 + $0x20] sm:$0xff]   ;;  %v1006_v33 = vld [vmem:[#allocation2 + $0x28] sm:$0xff]  }
  0x3b   :  { %v160_v23 = vadd.s32 41, %v76_v4  ;;  %v175_v24 = vadd.s32 46, %v75_v3  ;;  %v191_v25 = vadd.s32 50, %v75_v3  ;;  %v1140_v27 = vmov 7   ;;  %858 = vmatprep.subr.bf16.mxu0 %v1134_v2  ;;  %v1007_v34 = vld [vmem:[#allocation2 + $0x30] sm:$0xff]   ;;  %v1008_v35 = vld [vmem:[#allocation2 + $0x38] sm:$0xff]  }
  0x3c   :  { %v192_v28 = vadd.s32 50, %v76_v4  ;;  %vm1141_vm0 = vmmov 0   ;;  %v1009_v36 = vld [vmem:[#allocation5] sm:$0xff]   ;;  %v1010_v37 = vld [vmem:[#allocation5 + $0x8] sm:$0xff]   ;;  %v1011_v38 = vld [vmem:[#allocation5 + $0x10] sm:$0xff]   ;;  %v1280_v54 = vand.u32 127, %v79_v51 }
  0x3d   :  { %85 = vperm.xlu0 %952, %v76_v4   ;;  %101 = vperm.xlu1 %953, %v96_v6   ;;  %v1012_v39 = vld [vmem:[#allocation5 + $0x18] sm:$0xff]   ;;  %v1013_v40 = vld [vmem:[#allocation5 + $0x20] sm:$0xff]   ;;  %v1014_v41 = vld [vmem:[#allocation5 + $0x28] sm:$0xff]  }
  0x3e   :  { %859 = vmatpush3.bf16.msra.mxu0 %v1002_v29  ;;  %872 = vmatprep.mubr.msk.bf16.mxu0 %vm1141_vm0, %v1134_v2  ;;  %v1015_v42 = vld [vmem:[#allocation5 + $0x30] sm:$0xff]  }
  0x3f   :  { %860 = vmatprep.subr.bf16.mxu0 %v1134_v2  ;;  %892 = vmatprep.mubr.msk.bf16.mxu1 %vm1141_vm0, %v1134_v2 }
  0x40   :  { %877 = vmatpush3.bf16.msra.mxu1 %v1009_v36 }
  0x41   :  { %954 = vset.pattern.permute.xlu0 %v1135_v15  ;;  %955 = vset.pattern.permute.xlu1 %v1135_v15 }
  0x42   :  { %114 = vperm.xlu0 %954, %v111_v7   ;;  %117 = vperm.xlu1 %955, %v112_v8  }
  0x43   :  { %861 = vmatpush3.bf16.msra.mxu0 %v1003_v30  ;;  %878 = vmatprep.subr.bf16.mxu1 %v1134_v2 }
  0x44   :  { %862 = vmatprep.subr.bf16.mxu0 %v1134_v2  ;;  %879 = vmatpush3.bf16.msra.mxu1 %v1010_v37 }
  0x45   :  { %880 = vmatprep.subr.bf16.mxu1 %v1134_v2 }
  0x46   :  { %957 = vset.pattern.permute.xlu0 %v1136_v16  ;;  %956 = vset.pattern.permute.xlu1 %v1136_v16 }
  0x47   :  { %133 = vperm.xlu0 %957, %v128_v9   ;;  %130 = vperm.xlu1 %956, %v127_v10  }
  0x48   :  { %863 = vmatpush3.bf16.msra.mxu0 %v1004_v31  ;;  %881 = vmatpush3.bf16.msra.mxu1 %v1011_v38 }
  0x49   :  { %864 = vmatprep.subr.bf16.mxu0 %v1134_v2  ;;  %882 = vmatprep.subr.bf16.mxu1 %v1134_v2 }
  0x4b   :  { %959 = vset.pattern.permute.xlu0 %v1137_v17  ;;  %958 = vset.pattern.permute.xlu1 %v1138_v18 }
  0x4c   :  { %162 = vperm.xlu0 %959, %v159_v12   ;;  %146 = vperm.xlu1 %958, %v143_v11  }
  0x4d   :  { %865 = vmatpush3.bf16.msra.mxu0 %v1005_v32  ;;  %883 = vmatpush3.bf16.msra.mxu1 %v1012_v39 }
  0x4e   :  { %866 = vmatprep.subr.bf16.mxu0 %v1134_v2  ;;  %884 = vmatprep.subr.bf16.mxu1 %v1134_v2 }
  0x50   :  { %962 = vset.pattern.permute.xlu0 %v1139_v21  ;;  %149 = vperm.xlu1 %958, %v144_v13  }
  0x51   :  { %181 = vperm.xlu0 %962, %v176_v14   ;;  %867 = vmatpush3.bf16.msra.mxu0 %v1006_v33 }
  0x52   :  { %868 = vmatprep.subr.bf16.mxu0 %v1134_v2  ;;  %885 = vmatpush3.bf16.msra.mxu1 %v1013_v40 }
  0x53   :  { %886 = vmatprep.subr.bf16.mxu1 %v1134_v2 }
  0x54   :  { %960 = vset.pattern.permute.xlu1 %v1137_v17 }
  0x55   :  { %964 = vset.pattern.permute.xlu0 %v1132_v0  ;;  %165 = vperm.xlu1 %960, %v160_v23  }
  0x56   :  { %966 = vperm.xlu0 %964, %v965_v22   ;;  %869 = vmatpush3.bf16.msra.mxu0 %v1007_v34 }
  0x57   :  { %870 = vmatprep.subr.bf16.mxu0 %v1134_v2  ;;  %887 = vmatpush3.bf16.msra.mxu1 %v1014_v41 }
  0x58   :  { %888 = vmatprep.subr.bf16.mxu1 %v1134_v2 }
  0x59   :  { %961 = vset.pattern.permute.xlu1 %v1139_v21 }
  0x5a   :  { %982 = vset.pattern.permute.xlu0 %v1136_v16  ;;  %178 = vperm.xlu1 %961, %v175_v24  }
  0x5b   :  { %984 = vperm.xlu0 %982, %v965_v22   ;;  %871 = vmatpush3.bf16.msra.mxu0 %v1008_v35 }
  0x5c   :  { %896 = vmatprep.subr.bf16.mxu0 %v1134_v2  ;;  %889 = vmatpush3.bf16.msra.mxu1 %v1015_v42 }
  0x5d   :  { %890 = vmatprep.subr.bf16.mxu1 %v1134_v2 }
  0x5e   :  { %963 = vset.pattern.permute.xlu1 %v1140_v27 }
  0x5f   :  { %1000 = vset.pattern.permute.xlu0 %v1137_v17  ;;  %194 = vperm.xlu1 %963, %v191_v25  }
  0x63   :  { %197 = vperm.xlu1 %963, %v192_v28  }
  0x67   :  { %970 = vset.pattern.permute.xlu1 %v1133_v1 }
  0x68   :  { %972 = vperm.xlu1 %970, %v965_v22  }
  0x6c   :  { %976 = vset.pattern.permute.xlu1 %v1135_v15 }
  0x6d   :  { %978 = vperm.xlu1 %976, %v965_v22  }
  0x71   :  { %988 = vset.pattern.permute.xlu1 %v1138_v18 }
  0x72   :  { %990 = vperm.xlu1 %988, %v965_v22  }
  0x76   :  { %994 = vset.pattern.permute.xlu1 %v1137_v17 }
  0x77   :  { %996 = vperm.xlu1 %994, %v965_v22  }
  0xb8   :  { %v99_v43 = vpop.permute.xlu1 %98  ;;  %v83_v47 = vpop.permute.xlu0 %82 }
  0xb9   :  { %vm87_vm3 = vcmp.eq.s32.totalorder %v1280_v54, %v83_v47  ;;  %vm103_vm4 = vcmp.eq.s32.totalorder %v1280_v54, %v99_v43 }
  0xba   :  { %v760_v59 = vsel %vm87_vm3, 1.0, %v1134_v2  ;;  %v762_v60 = vsel %vm103_vm4, 1.0, %v1134_v2  ;;  %vm220_vm3 = vcmp.eq.s32.totalorder %v1280_v54, 62  ;;  %vm231_vm4 = vcmp.eq.s32.totalorder %v1280_v54, 63 }
  0xbb   :  { %v109_v3 = vadd.f32 %v762_v60, %v760_v59  ;;  %v1016_v60 = vld [vmem:[#allocation5 + $0x38] sm:$0xff]  }
  0xbc   :  { %v102_v44 = vpop.permute.xlu1 %101  ;;  %v86_v49 = vpop.permute.xlu0 %85  ;;  %891 = vmatpush3.bf16.msra.mxu1 %v1016_v60 }
  0xbd   :  { %vm88_vm1 = vcmp.eq.s32.totalorder %v1280_v54, %v86_v49  ;;  %vm104_vm2 = vcmp.eq.s32.totalorder %v1280_v54, %v102_v44  ;;  %916 = vmatprep.subr.bf16.mxu1 %v1134_v2 }
  0xbe   :  { %v761_v56 = vsel %vm88_vm1, 1.0, %v1134_v2  ;;  %v763_v57 = vsel %vm104_vm2, 1.0, %v1134_v2  ;;  %vm207_vm2 = vcmp.eq.s32.totalorder %v1280_v54, 61 }
  0xbf   :  { %v110_v62 = vadd.f32 %v763_v57, %v761_v56 }
  0xc1   :  { %v118_v45 = vpop.permute.xlu1 %117  ;;  %v115_v53 = vpop.permute.xlu0 %114 }
  0xc2   :  { %vm120_vm5 = vcmp.eq.s32.totalorder %v1280_v54, %v118_v45  ;;  %vm119_vm6 = vcmp.eq.s32.totalorder %v1280_v54, %v115_v53 }
  0xc3   :  { %v765_v61 = vsel %vm120_vm5, 1.0, %v1134_v2  ;;  %v764_v0 = vsel %vm119_vm6, 1.0, %v1134_v2  ;;  %vm242_vm5 = vcmp.eq.s32.totalorder %v1280_v54, 64  ;;  %vm253_vm6 = vcmp.eq.s32.totalorder %v1280_v54, 65 }
  0xc4   :  { %v126_v4 = vadd.f32 %v765_v61, %v110_v62  ;;  %v125_v7 = vadd.f32 %v764_v0, %v109_v3  ;;  %v1018_v61 = vld [vmem:[%s1392_s5 + $0x8] sm:$0xff]   ;;  %v1019_v62 = vld [vmem:[%s1392_s5 + $0x10] sm:$0xff]   ;;  %v1021_v0 = vld [vmem:[%s1392_s5 + $0x20] sm:$0xff]  }
  0xc6   :  { %v131_v46 = vpop.permute.xlu1 %130  ;;  %v134_v58 = vpop.permute.xlu0 %133 }
  0xc7   :  { %vm136_vm7 = vcmp.eq.s32.totalorder %v1280_v54, %v134_v58  ;;  %vm135_vm8 = vcmp.eq.s32.totalorder %v1280_v54, %v131_v46 }
  0xc8   :  { %v767_v5 = vsel %vm136_vm7, 1.0, %v1134_v2  ;;  %v766_v6 = vsel %vm135_vm8, 1.0, %v1134_v2  ;;  %vm264_vm7 = vcmp.eq.s32.totalorder %v1280_v54, 66 }
  0xc9   :  { %v142_v12 = vadd.f32 %v767_v5, %v126_v4  ;;  %v141_v13 = vadd.f32 %v766_v6, %v125_v7 }
  0xcb   :  { %v147_v48 = vpop.permute.xlu1 %146  ;;  %v163_v1 = vpop.permute.xlu0 %162 }
  0xcc   :  { %vm151_vm9 = vcmp.eq.s32.totalorder %v1280_v54, %v147_v48  ;;  %vm167_vm12 = vcmp.eq.s32.totalorder %v1280_v54, %v163_v1  ;;  %v1022_v1 = vld [vmem:[%s1392_s5 + $0x28] sm:$0xff]  }
  0xcd   :  { %v768_v9 = vsel %vm151_vm9, 1.0, %v1134_v2  ;;  %v770_v17 = vsel %vm167_vm12, 1.0, %v1134_v2 }
  0xce   :  { %v157_v15 = vadd.f32 %v768_v9, %v141_v13  ;;  %v1024_v9 = vld [vmem:[%s1392_s5 + $0x38] sm:$0xff]  }
  0xcf   :  { %v150_v50 = vpop.permute.xlu1 %149  ;;  %v1028_v13 = vld [vmem:[#allocation7 + $0x18] sm:$0xff]  }
  0xd0   :  { %vm152_vm10 = vcmp.eq.s32.totalorder %v1280_v54, %v150_v50  ;;  %v182_v11 = vpop.permute.xlu0 %181  ;;  %v173_v22 = vadd.f32 %v770_v17, %v157_v15  ;;  %v1030_v15 = vld [vmem:[#allocation7 + $0x28] sm:$0xff]  }
  0xd1   :  { %v769_v10 = vsel %vm152_vm10, 1.0, %v1134_v2  ;;  %vm184_vm13 = vcmp.eq.s32.totalorder %v1280_v54, %v182_v11  ;;  %v1026_v11 = vld [vmem:[#allocation7 + $0x8] sm:$0xff]  }
  0xd2   :  { %v158_v16 = vadd.f32 %v769_v10, %v142_v12  ;;  %v773_v20 = vsel %vm184_vm13, 1.0, %v1134_v2  ;;  %v1025_v10 = vld [vmem:[#allocation7] sm:$0xff]   ;;  %v1027_v12 = vld [vmem:[#allocation7 + $0x10] sm:$0xff]  }
  0xd4   :  { %v166_v52 = vpop.permute.xlu1 %165 }
  0xd5   :  { %vm168_vm11 = vcmp.eq.s32.totalorder %v1280_v54, %v166_v52  ;;  %v967_v24 = vpop.permute.xlu0 %966 }
  0xd6   :  { %v771_v14 = vsel %vm168_vm11, 1.0, %v1134_v2  ;;  %v969_v30 = vunpack.i.h.bf16 %v967_v24  ;;  %v968_v31 = vunpack.i.l.bf16 %v967_v24 }
  0xd7   :  { %v174_v19 = vadd.f32 %v771_v14, %v158_v16  ;;  %v1029_v14 = vld [vmem:[#allocation7 + $0x20] sm:$0xff]  }
  0xd8   :  { %v784_v16 = vld [vmem:[%s1391_s4] ss:$0 sm:$0xff] }
  0xd9   :  { %v179_v55 = vpop.permute.xlu1 %178  ;;  %v190_v26 = vadd.f32 %v773_v20, %v174_v19 }
  0xda   :  { %vm183_vm14 = vcmp.eq.s32.totalorder %v1280_v54, %v179_v55  ;;  %v985_v37 = vpop.permute.xlu0 %984 }
  0xdb   :  { %v772_v21 = vsel %vm183_vm14, 1.0, %v1134_v2  ;;  %v987_v43 = vunpack.i.h.bf16 %v985_v37  ;;  %v986_v44 = vunpack.i.l.bf16 %v985_v37 }
  0xdc   :  { %v189_v27 = vadd.f32 %v772_v21, %v173_v22 }
  0xde   :  { %v195_v63 = vpop.permute.xlu1 %194 }
  0xdf   :  { %vm199_vm15 = vcmp.eq.s32.totalorder %v1280_v54, %v195_v63  ;;  %v1020_v63 = vld [vmem:[%s1392_s5 + $0x18] sm:$0xff]  }
  0xe0   :  { %v774_v23 = vsel %vm199_vm15, 1.0, %v1134_v2 }
  0xe1   :  { %v205_v29 = vadd.f32 %v774_v23, %v189_v27 }
  0xe2   :  { %v198_v8 = vpop.permute.xlu1 %197 }
  0xe3   :  { %vm200_vm1 = vcmp.eq.s32.totalorder %v1280_v54, %v198_v8  ;;  %v218_v39 = vsel %vm207_vm2, %v968_v31, %v205_v29  ;;  %v1017_v54 = vld [vmem:[%s1392_s5] sm:$0xff]   ;;  %v1023_v8 = vld [vmem:[%s1392_s5 + $0x30] sm:$0xff]   ;;  %v1032_v29 = vld [vmem:[#allocation7 + $0x38] sm:$0xff]  }
  0xe4   :  { %v775_v25 = vsel %vm200_vm1, 1.0, %v1134_v2 }
  0xe5   :  { %v206_v32 = vadd.f32 %v775_v25, %v190_v26 }
  0xe7   :  { %v973_v18 = vpop.permute.xlu1 %972  ;;  %v219_v40 = vsel %vm207_vm2, %v969_v30, %v206_v32  ;;  %v793_v30 = vld [vmem:[%s1393_s6] ss:$0 sm:$0xff]  ;;  %s1142_s6 = smov [#allocation8]  }
  0xe8   :  { %v975_v33 = vunpack.i.h.bf16 %v973_v18  ;;  %v974_v34 = vunpack.i.l.bf16 %v973_v18  ;;  %s747_s0 = sshll.u32 %s1142_s6, 4  ;;  %s748_s0 = int_to_ptr.vmem [resolvable:$true] %s747_s0 }
  0xe9   :  { %s1099_s29 = scalar_lea.vmem %s748_s0, 128  ;;  %p1104_p11 = scmp.lt.s32.totalorder %s748_s0, %s748_s0 }
  0xea   :  { %v230_v41 = vsel %vm220_vm3, %v975_v33, %v219_v40  ;;  %v229_v42 = vsel %vm220_vm3, %v974_v34, %v218_v39  ;;  %p1100_p10 = scmp.ne.s32.totalorder %s748_s0, %s1099_s29  ;;  %p1105_p12 = scmp.lt.s32.totalorder %s1099_s29, %s1099_s29 }
  0xec   :  { %v979_v28 = vpop.permute.xlu1 %978  ;;  %p1106_p13 = por %p1105_p12, %p1104_p11 }
  0xed   :  { %v981_v35 = vunpack.i.h.bf16 %v979_v28  ;;  %v980_v36 = vunpack.i.l.bf16 %v979_v28  ;;  %v1031_v28 = vld [vmem:[#allocation7 + $0x30] sm:$0xff]  }
  0xee   :  { %p1107_p0 = pnand %p1106_p13, %p1100_p10 }
  0xef   :  { %v240_v45 = vsel %vm231_vm4, %v980_v36, %v229_v42  ;;  %v241_v46 = vsel %vm231_vm4, %v981_v35, %v230_v41 }
  0xf0   :  { %v251_v50 = vsel %vm242_vm5, %v986_v44, %v240_v45  ;;  %v252_v51 = vsel %vm242_vm5, %v987_v43, %v241_v46 }
  0xf1   :  { %v991_v38 = vpop.permute.xlu1 %990 }
  0xf2   :  { %v993_v47 = vunpack.i.h.bf16 %v991_v38  ;;  %v992_v48 = vunpack.i.l.bf16 %v991_v38 }
  0xf4   :  { %v262_v55 = vsel %vm253_vm6, %v992_v48, %v251_v50  ;;  %v263_v56 = vsel %vm253_vm6, %v993_v47, %v252_v51 }
  0xf6   :  { %v997_v49 = vpop.permute.xlu1 %996 }
  0xf7   :  { %v999_v52 = vunpack.i.h.bf16 %v997_v49  ;;  %v998_v53 = vunpack.i.l.bf16 %v997_v49 }
  0xf9   :  { %v273_v57 = vsel %vm264_vm7, %v998_v53, %v262_v55  ;;  %v274_v58 = vsel %vm264_vm7, %v999_v52, %v263_v56 }
  0xfa   :  { %v275_v59 = vpack.c.bf16 %v274_v58, %v273_v57 }
  0xfc   :  { %873 = vmatmul.mubr.bf16.vlgmr.msra.gmra.mrb[0].mxu0 %v275_v59 }
  0xfd   :  { %912 = vmatprep.mubr.msk.bf16.mxu0 %vm1141_vm0, %v1134_v2  ;;  %897 = vmatpush3.bf16.msra.mxu0 %v1017_v54 }
  0xfe   :  { %898 = vmatprep.subr.bf16.mxu0 %v1134_v2 }
 0x101   :  { %899 = vmatpush3.bf16.msra.mxu0 %v1018_v61 }
 0x102   :  { %900 = vmatprep.subr.bf16.mxu0 %v1134_v2 }
 0x105   :  { %901 = vmatpush3.bf16.msra.mxu0 %v1019_v62 }
 0x106   :  { %902 = vmatprep.subr.bf16.mxu0 %v1134_v2 }
 0x109   :  { %903 = vmatpush3.bf16.msra.mxu0 %v1020_v63 }
 0x10a   :  { %904 = vmatprep.subr.bf16.mxu0 %v1134_v2 }
 0x10d   :  { %905 = vmatpush3.bf16.msra.mxu0 %v1021_v0 }
 0x10e   :  { %906 = vmatprep.subr.bf16.mxu0 %v1134_v2 }
 0x111   :  { %907 = vmatpush3.bf16.msra.mxu0 %v1022_v1 }
 0x112   :  { %908 = vmatprep.subr.bf16.mxu0 %v1134_v2 }
 0x115   :  { %909 = vmatpush3.bf16.msra.mxu0 %v1023_v8 }
 0x116   :  { %910 = vmatprep.subr.bf16.mxu0 %v1134_v2 }
 0x119   :  { %911 = vmatpush3.bf16.msra.mxu0 %v1024_v9 }
 0x1cf   :  { %v374_v3 = vpop.f32.mrb[0].mxu0 }
 0x1d0   :  { %v874_v4 = vpop.f32.mrb[1].mxu0 }
 0x1d1   :  { %v377_v5 = vpop.f32.mrb[2].mxu0 }
 0x1d2   :  { %v381_v6 = vpack.c.bf16 %v377_v5, %v374_v3  ;;  %v875_v7 = vpop.f32.mrb[3].mxu0 }
 0x1d4   :  { %893 = vmatmul.mubr.bf16.vlgmr.msra.gmra.mrb[0].mxu1 %v381_v6 }
 0x1d5   :  { %932 = vmatprep.mubr.msk.bf16.mxu1 %vm1141_vm0, %v1134_v2  ;;  %917 = vmatpush3.bf16.msra.mxu1 %v1025_v10 }
 0x1d6   :  { %918 = vmatprep.subr.bf16.mxu1 %v1134_v2 }
 0x1d9   :  { %919 = vmatpush3.bf16.msra.mxu1 %v1026_v11 }
 0x1da   :  { %920 = vmatprep.subr.bf16.mxu1 %v1134_v2 }
 0x1dd   :  { %921 = vmatpush3.bf16.msra.mxu1 %v1027_v12 }
 0x1de   :  { %922 = vmatprep.subr.bf16.mxu1 %v1134_v2 }
 0x1e1   :  { %923 = vmatpush3.bf16.msra.mxu1 %v1028_v13 }
 0x1e2   :  { %924 = vmatprep.subr.bf16.mxu1 %v1134_v2 }
 0x1e5   :  { %925 = vmatpush3.bf16.msra.mxu1 %v1029_v14 }
 0x1e6   :  { %926 = vmatprep.subr.bf16.mxu1 %v1134_v2 }
 0x1e9   :  { %927 = vmatpush3.bf16.msra.mxu1 %v1030_v15 }
 0x1ea   :  { %928 = vmatprep.subr.bf16.mxu1 %v1134_v2 }
 0x1ed   :  { %929 = vmatpush3.bf16.msra.mxu1 %v1031_v28 }
 0x1ee   :  { %930 = vmatprep.subr.bf16.mxu1 %v1134_v2  ;;  %v802_v2 = vld [vmem:[%s1395_s8] ss:$0 sm:$0xff] }
 0x1f1   :  { %931 = vmatpush3.bf16.msra.mxu1 %v1032_v29 }
 0x2a7   :  { %v487_v17 = vpop.f32.mrb[0].mxu1 }
 0x2a8   :  { %v488_v18 = vadd.f32 %v784_v16, %v487_v17  ;;  %v894_v19 = vpop.f32.mrb[1].mxu1 }
 0x2a9   :  { %v490_v20 = vpop.f32.mrb[2].mxu1 }
 0x2aa   :  { %v496_v21 = vmul.f32 0.01, %v488_v18  ;;  %v491_v22 = vadd.f32 %v784_v16, %v490_v20  ;;  %v895_v23 = vpop.f32.mrb[3].mxu1  ;;  %vm494_vm0 = vcmp.ge.f32.partialorder %v488_v18, 0.0 }
 0x2ac   :  { %vm495_vm8 = vcmp.ge.f32.partialorder %v491_v22, 0.0  ;;  %v497_v24 = vmul.f32 0.01, %v491_v22  ;;  %v498_v25 = vsel %vm494_vm0, %v488_v18, %v496_v21 }
 0x2ae   :  { %v499_v26 = vsel %vm495_vm8, %v491_v22, %v497_v24 }
 0x2af   :  { %v500_v27 = vpack.c.bf16 %v499_v26, %v498_v25 }
 0x2b1   :  { %913 = vmatmul.mubr.bf16.vlgmr.msra.gmra.mrb[4].mxu0 %v500_v27 }
 0x384   :  { %v606_v31 = vpop.f32.mrb[4].mxu0 }
 0x385   :  { %v607_v32 = vadd.f32 %v793_v30, %v606_v31  ;;  %v914_v33 = vpop.f32.mrb[5].mxu0 }
 0x386   :  { %v609_v34 = vpop.f32.mrb[6].mxu0 }
 0x387   :  { %v615_v35 = vmul.f32 0.01, %v607_v32  ;;  %v610_v36 = vadd.f32 %v793_v30, %v609_v34  ;;  %v915_v37 = vpop.f32.mrb[7].mxu0  ;;  %vm613_vm9 = vcmp.ge.f32.partialorder %v607_v32, 0.0 }
 0x389   :  { %vm614_vm10 = vcmp.ge.f32.partialorder %v610_v36, 0.0  ;;  %v616_v38 = vmul.f32 0.01, %v610_v36  ;;  %v617_v39 = vsel %vm613_vm9, %v607_v32, %v615_v35 }
 0x38b   :  { %v618_v40 = vsel %vm614_vm10, %v610_v36, %v616_v38 }
 0x38c   :  { %v619_v41 = vpack.c.bf16 %v618_v40, %v617_v39 }
 0x38e   :  { %933 = vmatmul.mubr.bf16.vlgmr.msra.gmra.mrb[4].mxu1 %v619_v41 }
 0x461   :  { %v725_v42 = vpop.f32.mrb[4].mxu1 }
 0x462   :  { %v934_v43 = vpop.f32.mrb[5].mxu1  ;;  %v726_v45 = vadd.f32 %v802_v2, %v725_v42 }
 0x463   :  { %v728_v44 = vpop.f32.mrb[6].mxu1 }
 0x464   :  { %v729_v46 = vadd.f32 %v802_v2, %v728_v44  ;;  %v935_v47 = vpop.f32.mrb[7].mxu1 }
 0x466   :  { %v818_v48 = vpack.c.bf16 %v729_v46, %v726_v45 }
 0x468   :  { %819 = vst [vmem:[#allocation8] sm:$0xff] %v818_v48  }
 0x469   :  { %1110 = shalt.err (!%p1107_p0)
}
 0x46a   :  { %s1111_s11 = scalar_lea.hbm %s1396_s9, 128 }
 0x46b   :  { %p1112_p1 = scmp.ne.s32.totalorder %s1396_s9, %s1111_s11  ;;  %p1115_p2 = scmp.lt.u32.totalorder %s1111_s11, %s1396_s9 }
 0x46d   :  { %p1117_p3 = pnand %p1115_p2, %p1112_p1 }
 0x46f   :  { %1120 = shalt.err (!%p1117_p3)
}
 0x470   :  { %753 = dma.vmem_to_hbm [thread:$0]  %s748_s0, 128, %s1396_s9, [#allocation4], %s1129_s21, %s1129_s21, %s1130_s22  }
 0x471   :  { %1125 = dma.done.wait [#allocation4], 128  }
 0x472   :  { %1126 = vsyncadd [#allocation4], 4294967168 }
 0x473   :  { %757 = vsyncpa [#allocation3], 1 }
 0x474   :  { %758 = vsyncpa [#allocation6], 1 }
 0x475   :  { %759 = vsyncpa [#allocation4], 1 }

</bundles_post_ra>
